<compile_context>
chip_gen: v7x
topology: tpu7x:2x2x1
jax: 0.10.0
libtpu: 0.0.40
codegen_flags: <defaults>
</compile_context>

<pallas_src>
import functools
import math

import jax
import jax.numpy as jnp
from jax.experimental import pallas as pl
from jax.experimental.pallas import tpu as pltpu


def _sinpos_kernel(x3_ref, s_ref, div_ref, off_ref, o_ref):
    # x3_ref:  (tr, Kc)  bf16: [x_hi | x_mid | x_lo] chunks of the G folded indices
    # s_ref:   (Kc, L)   bf16 0/1 one-hot spread matrix (row j -> fold j % G)
    # div_ref: (1, L)    f32 div_term[d//2] tiled G times along lanes (L = G*D)
    # off_ref: (1, L)    f32 phase offsets: 0 on even d, pi/2 on odd d, tiled G times
    # o_ref:   (tr, L)   f32 lane-dense interleaved sin/cos embeddings
    #
    # MXU: one-hot spread; the three bf16 chunks of each index reassemble exactly to
    # the original f32 value inside the f32 accumulators (0/1 weights are bf16-exact).
    spread = jnp.dot(x3_ref[...], s_ref[...], preferred_element_type=jnp.float32)
    # VPU: scale + phase, one sin per output element (cos(t) == sin(t + pi/2)).
    o_ref[...] = jnp.sin(spread * div_ref[...] + off_ref[...])


def _fold_factor(m, d_model):
    """Rows folded per lane-dense output row.

    Power of two dividing M; at least lcm(128, D)/D when M allows (unmasked stores),
    grown up to 32/64 so the narrow input block pads less, while keeping >= 8 rows
    for the spread matmul.
    """
    g_req = 128 // math.gcd(128, d_model)   # minimum fold for a 128-lane-dense row
    pow2_m = m & (-m)                       # largest power of two dividing m
    g = min(max(32, g_req), pow2_m)
    while g > 1 and (m // g) < 8:
        g //= 2
    return max(g, 1)


@functools.partial(jax.jit, static_argnames=("d_model", "block_bytes"))
def sinusoidal_positional_embedding2(emb_indices, d_model, block_bytes=4 * 1024 * 1024):
    """Equivalent of SinusoidalPositionalEmbedding2.forward.

    Args:
      emb_indices: (N', K, 2) float array.
      d_model: embedding dimension D (must be even).
      block_bytes: target f32 output bytes per grid block (tiling knob).

    Returns:
      embeddings: (N', K, 2, D) float32.
    """
    assert emb_indices.ndim == 3, "only support 3 dimensions."
    if d_model % 2 != 0:
        raise ValueError(f"Sinusoidal positional encoding with odd d_model: {d_model}")
    n, k, two = emb_indices.shape
    m = n * k * two

    # Deterministic buffer from __init__ (no checkpoint).
    div_indices = jnp.arange(0, d_model, 2, dtype=jnp.float32)
    div_term = jnp.exp(div_indices * (-math.log(10000.0) / d_model))               # (D/2,)
    div_full = jnp.repeat(div_term, 2)                                              # (D,)
    off_full = jnp.tile(jnp.array([0.0, math.pi / 2.0], jnp.float32), d_model // 2)  # (D,)

    g_fold = _fold_factor(m, d_model)
    r = m // g_fold                      # output rows (exact divisor -> no padding)
    l_width = g_fold * d_model           # lane-dense output row width

    # --- wrapper-side prep (all on the tiny M-element input, negligible cost) -------
    # Exact 3-way bf16 split of the f32 indices (hi + mid + lo == x exactly).
    x = emb_indices.reshape(r, g_fold).astype(jnp.float32)
    x_hi = x.astype(jnp.bfloat16)
    res1 = x - x_hi.astype(jnp.float32)
    x_mid = res1.astype(jnp.bfloat16)
    res2 = res1 - x_mid.astype(jnp.float32)
    x_lo = res2.astype(jnp.bfloat16)
    x3 = jnp.concatenate([x_hi, x_mid, x_lo], axis=1)                               # (r, 3G)

    k_active = 3 * g_fold
    k_mat = ((k_active + 15) // 16) * 16           # bf16 sublane-quantum aligned K
    if k_mat > k_active:
        x3 = jnp.pad(x3, ((0, 0), (0, k_mat - k_active)))

    # 0/1 one-hot spread matrix: row j (j < 3G) scatters chunk j to lanes of fold j%G.
    row_ids = jnp.arange(k_mat)
    row_fold = jnp.where(row_ids < k_active, row_ids % g_fold, -1)
    lane_fold = jnp.arange(l_width) // d_model
    s_mat = (row_fold[:, None] == lane_fold[None, :]).astype(jnp.bfloat16)           # (Kc, L)

    div_row = jnp.tile(div_full, g_fold).reshape(1, l_width)
    off_row = jnp.tile(off_full, g_fold).reshape(1, l_width)

    # --- block / grid sizing --------------------------------------------------------
    row_out_bytes = l_width * 4
    tr = max(1, block_bytes // row_out_bytes)
    if r < 64:
        tr = r                                      # tiny problem: one full block
    else:
        # >= 2 blocks so v7x's second TensorCore gets work ("parallel" grid axis).
        half = (((r + 1) // 2) + 15) // 16 * 16
        tr = min(tr, half)
        tr = max(16, (tr // 16) * 16)               # f32 (8) and bf16 (16) row alignment
    grid = (pl.cdiv(r, tr),)

    # Explicit scoped-VMEM budget: double-buffered output + lane-padded bf16 input,
    # plus allowance for the dot result / elementwise temporaries and constants.
    out_block_bytes = tr * l_width * 4
    in_block_bytes = tr * max(k_mat, 128) * 2
    const_bytes = (max(k_mat, 16) * max(l_width, 128) * 2
                   + 2 * 8 * max(l_width, 128) * 4)
    vmem_limit = (2 * out_block_bytes + 2 * in_block_bytes
                  + 3 * out_block_bytes + 2 * const_bytes + (4 << 20))
    vmem_limit = int(min(max(vmem_limit, 16 << 20), 56 << 20))

    out = pl.pallas_call(
        _sinpos_kernel,
        out_shape=jax.ShapeDtypeStruct((r, l_width), jnp.float32),
        grid_spec=pltpu.PrefetchScalarGridSpec(
            num_scalar_prefetch=0,
            grid=grid,
            in_specs=[
                pl.BlockSpec((tr, k_mat), lambda i: (i, 0)),
                pl.BlockSpec((k_mat, l_width), lambda i: (0, 0)),
                pl.BlockSpec((1, l_width), lambda i: (0, 0)),
                pl.BlockSpec((1, l_width), lambda i: (0, 0)),
            ],
            out_specs=pl.BlockSpec((tr, l_width), lambda i: (i, 0)),
        ),
        compiler_params=pltpu.CompilerParams(
            dimension_semantics=("parallel",),
            vmem_limit_bytes=vmem_limit,
        ),
    )(x3, s_mat, div_row, off_row)

    # (R, G*D) is element-for-element the row-major (M, D) buffer -> free reshape.
    return out.reshape(n, k, two, d_model)


def _reference(emb_indices, d_model):
    """Pure-JAX transcription of the PyTorch forward, for verification."""
    div_indices = jnp.arange(0, d_model, 2, dtype=jnp.float32)
    div_term = jnp.exp(div_indices * (-jnp.log(10000.0) / d_model))
    input_shape = emb_indices.shape
    omegas = emb_indices.reshape(-1, 1, 1) * div_term.reshape(1, -1, 1)
    sin_e = jnp.sin(omegas)
    cos_e = jnp.cos(omegas)
    emb = jnp.concatenate([sin_e, cos_e], axis=2)
    return emb.reshape(-1, input_shape[1], 2, d_model)


if __name__ == "__main__":
    key = jax.random.PRNGKey(0)
    k1, k2, k3, k4 = jax.random.split(key, 4)
    d_model = 32

    # Case 1: primary small shape (N'=2, K=8, 2), D=32 -> G=4, L=128, single block.
    emb1 = jax.random.uniform(k1, (2, 8, 2), jnp.float32, minval=0.0, maxval=50.0)
    out1 = jax.block_until_ready(sinusoidal_positional_embedding2(emb1, d_model))
    assert out1.shape == (2, 8, 2, d_model), out1.shape
    assert jnp.allclose(out1, _reference(emb1, d_model), atol=1e-5, rtol=1e-5), "case 1"

    # Case 2: multi-block grid with a partial (masked) final block:
    # M=900 -> G=4, R=225; tiny block_bytes forces tr=32 -> grid of 8 blocks.
    emb2 = jax.random.uniform(k2, (50, 9, 2), jnp.float32, minval=0.0, maxval=50.0)
    out2 = jax.block_until_ready(
        sinusoidal_positional_embedding2(emb2, d_model, block_bytes=32 * 128 * 4))
    assert jnp.allclose(out2, _reference(emb2, d_model), atol=1e-5, rtol=1e-5), "case 2"

    # Case 3: awkward M fallback (M=30 -> G=2, L=64, masked narrow stores) still correct.
    emb3 = jax.random.uniform(k3, (3, 5, 2), jnp.float32, minval=0.0, maxval=50.0)
    out3 = jax.block_until_ready(sinusoidal_positional_embedding2(emb3, d_model))
    assert jnp.allclose(out3, _reference(emb3, d_model), atol=1e-5, rtol=1e-5), "case 3"

    # Case 4: large fold (M=256 -> G=32, L=1024, Kc=96) exercising the wide MXU spread.
    emb4 = jax.random.uniform(k4, (16, 8, 2), jnp.float32, minval=0.0, maxval=50.0)
    out4 = jax.block_until_ready(sinusoidal_positional_embedding2(emb4, d_model))
    assert jnp.allclose(out4, _reference(emb4, d_model), atol=1e-5, rtol=1e-5), "case 4"

    print("KERNEL_OK")
</pallas_src>

<mosaic_0001>
module attributes {stable_mosaic.version = 11 : i64} {
  func.func @_sinpos_kernel(%arg0: i32, %arg1: memref<8x16xbf16, #tpu.memory_space<vmem>>, %arg2: memref<16x128xbf16, #tpu.memory_space<vmem>>, %arg3: memref<1x128xf32, #tpu.memory_space<vmem>>, %arg4: memref<1x128xf32, #tpu.memory_space<vmem>>, %arg5: memref<8x128xf32, #tpu.memory_space<vmem>>) attributes {dimension_semantics = [#tpu.dimension_semantics<parallel>], iteration_bounds = array<i64: 1>, scalar_prefetch = 0 : i64, scratch_operands = 0 : i64, tpu.core_type = #tpu.core_type<tc>, window_params = [{transform_indices = @transform_0, window_bounds = array<i64: 8, 16>}, {pipeline_mode = #tpu.pipeline_mode<synchronous>, transform_indices = @transform_1, window_bounds = array<i64: 16, 128>}, {pipeline_mode = #tpu.pipeline_mode<synchronous>, transform_indices = @transform_2, window_bounds = array<i64: 1, 128>}, {pipeline_mode = #tpu.pipeline_mode<synchronous>, transform_indices = @transform_3, window_bounds = array<i64: 1, 128>}, {transform_indices = @transform_4, window_bounds = array<i64: 8, 128>}]} {
    %c0 = arith.constant 0 : index
    %c0_0 = arith.constant 0 : index
    %0 = vector.load %arg1[%c0, %c0_0] : memref<8x16xbf16, #tpu.memory_space<vmem>>, vector<8x16xbf16>
    %c0_1 = arith.constant 0 : index
    %c0_2 = arith.constant 0 : index
    %1 = vector.load %arg2[%c0_1, %c0_2] : memref<16x128xbf16, #tpu.memory_space<vmem>>, vector<16x128xbf16>
    %cst = arith.constant dense<0.000000e+00> : vector<8x128xf32>
    %2 = tpu.matmul %0, %1, %cst {dimension_numbers = #tpu.dot_dimension_numbers<[1], [0], [0], [1], [0, 0, 1, 1], [], []>} : vector<8x16xbf16>, vector<16x128xbf16>, vector<8x128xf32> -> vector<8x128xf32>
    %c0_3 = arith.constant 0 : index
    %c0_4 = arith.constant 0 : index
    %3 = vector.load %arg3[%c0_3, %c0_4] : memref<1x128xf32, #tpu.memory_space<vmem>>, vector<1x128xf32>
    %4 = vector.broadcast %3 : vector<1x128xf32> to vector<8x128xf32>
    %5 = arith.mulf %2, %4 : vector<8x128xf32>
    %c0_5 = arith.constant 0 : index
    %c0_6 = arith.constant 0 : index
    %6 = vector.load %arg4[%c0_5, %c0_6] : memref<1x128xf32, #tpu.memory_space<vmem>>, vector<1x128xf32>
    %7 = vector.broadcast %6 : vector<1x128xf32> to vector<8x128xf32>
    %8 = arith.addf %5, %7 : vector<8x128xf32>
    %9 = math.sin %8 : vector<8x128xf32>
    %c0_7 = arith.constant 0 : index
    %c0_8 = arith.constant 0 : index
    %10 = vector.load %arg5[%c0_7, %c0_8] : memref<8x128xf32, #tpu.memory_space<vmem>>, vector<8x128xf32>
    tpu.vector_store %arg5[%c0_7, %c0_8], %9 {strides = array<i32>} : memref<8x128xf32, #tpu.memory_space<vmem>>, vector<8x128xf32>,
    return
  }
  func.func @transform_0(%arg0: i32) -> (i32, i32) {
    %c0_i32 = arith.constant 0 : i32
    %c0_i32_0 = arith.constant 0 : i32
    return %arg0, %c0_i32 : i32, i32
  }
  func.func @transform_1(%arg0: i32) -> (i32, i32) {
    %c0_i32 = arith.constant 0 : i32
    %c0_i32_0 = arith.constant 0 : i32
    %c0_i32_1 = arith.constant 0 : i32
    return %c0_i32, %c0_i32_0 : i32, i32
  }
  func.func @transform_2(%arg0: i32) -> (i32, i32) {
    %c0_i32 = arith.constant 0 : i32
    %c0_i32_0 = arith.constant 0 : i32
    %c0_i32_1 = arith.constant 0 : i32
    return %c0_i32, %c0_i32_0 : i32, i32
  }
  func.func @transform_3(%arg0: i32) -> (i32, i32) {
    %c0_i32 = arith.constant 0 : i32
    %c0_i32_0 = arith.constant 0 : i32
    %c0_i32_1 = arith.constant 0 : i32
    return %c0_i32, %c0_i32_0 : i32, i32
  }
  func.func @transform_4(%arg0: i32) -> (i32, i32) {
    %c0_i32 = arith.constant 0 : i32
    %c0_i32_0 = arith.constant 0 : i32
    return %arg0, %c0_i32 : i32, i32
  }
}

</mosaic_0001>

<bundles_post_ra>
// kernel: tile.17
= control target key start
LH: loop header
LB: loop body
LE: loop exit
PB: predicated region body
PF: predicated region fallthrough
CT: control target
= control target key end

     0   :  { %s22_s0 = inlined_call_operand.vmem [shape: f32[32], index: 0, kind: input, shape index: {}]   ;;  %s23_s1 = inlined_call_operand.vmem [shape: f32[4,32], index: 1, kind: output, shape index: {}]  }
   0x1   :  { %v4_v0 = vld [vmem:[%s22_s0] ss:$0 sm:$0xff] }
   0x2   :  { %5 = vst [vmem:[%s23_s1] sm:$0xf] %v4_v0 }

// kernel: tile.16
= control target key start
LH: loop header
LB: loop body
LE: loop exit
PB: predicated region body
PF: predicated region fallthrough
CT: control target
= control target key end

     0   :  { %s131_s10 = smov 30   ;;  %s132_s11 = smov 26   ;;  %vm3_vm0 = vcmask 15360   ;;  %vm9_vm1 = vcmask 261360   ;;  %vm15_vm2 = vcmask 244960   ;;  %vm21_vm3 = vcmask 228560   ;;  %s207_s0 = inlined_call_operand.vmem [shape: f32[16,2], index: 0, kind: input, shape index: {}]   ;;  %s208_s1 = inlined_call_operand.vmem [shape: f32[32], index: 1, kind: output, shape index: {}]  }
   0x1   :  { %v101_v0 = vld [vmem:[%s207_s0 + $0xf] sm:$0x1]   ;;  %v103_v1 = vld [vmem:[%s207_s0 + $0xd] sm:$0x1]   ;;  %v102_v2 = vld [vmem:[%s207_s0 + $0xe] sm:$0x1]  }
   0x2   :  { %7 = vrot.lane.b32.xlu0 %v101_v0, %s131_s10  ;;  %19 = vrot.lane.b32.xlu1 %v103_v1, %s132_s11  ;;  %v104_v3 = vld [vmem:[%s207_s0 + $0xc] sm:$0x1]   ;;  %s133_s16 = smov 28   ;;  %s134_s17 = smov 24   ;;  %v105_v4 = vld [vmem:[%s207_s0 + $0xb] sm:$0x1]  }
   0x3   :  { %v106_v5 = vld [vmem:[%s207_s0 + $0xa] sm:$0x1]   ;;  %v2_v6 = vld [vmem:[%s207_s0] sm:$0x1]   ;;  %s135_s24 = smov 22   ;;  %s136_s25 = smov 20  }
   0x4   :  { %4 = vst.msk [vmem:[#allocation0] sm:$0x1] %vm3_vm0, %v2_v6   ;;  %v107_v7 = vld [vmem:[%s207_s0 + $0x9] sm:$0x1]   ;;  %v108_v8 = vld [vmem:[%s207_s0 + $0x8] sm:$0x1]  }
   0x5   :  { %s137_s30 = smov 18   ;;  %s138_s2 = smov 16   ;;  %v109_v9 = vld [vmem:[%s207_s0 + $0x7] sm:$0x1]   ;;  %v110_v10 = vld [vmem:[%s207_s0 + $0x6] sm:$0x1]  }
   0x6   :  { %13 = vrot.lane.b32.xlu0 %v102_v2, %s133_s16  ;;  %25 = vrot.lane.b32.xlu1 %v104_v3, %s134_s17  ;;  %s139_s7 = smov 14   ;;  %s140_s8 = smov 12   ;;  %v111_v11 = vld [vmem:[%s207_s0 + $0x5] sm:$0x1]   ;;  %v112_v12 = vld [vmem:[%s207_s0 + $0x4] sm:$0x1]  }
   0x7   :  { %s141_s13 = smov 10   ;;  %s142_s14 = smov 8   ;;  %v113_v13 = vld [vmem:[%s207_s0 + $0x3] sm:$0x1]   ;;  %v114_v14 = vld [vmem:[%s207_s0 + $0x2] sm:$0x1]  }
   0x8   :  { %s143_s19 = smov 6   ;;  %s144_s20 = smov 4   ;;  %v115_v15 = vld [vmem:[%s207_s0 + $0x1] sm:$0x1]   ;;  %vm27_vm4 = vcmask 212160   ;;  %vm33_vm5 = vcmask 195760  }
   0x9   :  { %s145_s0 = smov 2   ;;  %vm39_vm6 = vcmask 179360   ;;  %vm45_vm7 = vcmask 162960   ;;  %vm51_vm8 = vcmask 146560   ;;  %vm57_vm9 = vcmask 130160  }
   0xa   :  { %31 = vrot.lane.b32.xlu0 %v105_v4, %s135_s24  ;;  %37 = vrot.lane.b32.xlu1 %v106_v5, %s136_s25  ;;  %vm63_vm10 = vcmask 113760   ;;  %vm69_vm11 = vcmask 97360   ;;  %vm75_vm12 = vcmask 80960   ;;  %vm81_vm13 = vcmask 64560  }
   0xb   :  { %vm87_vm14 = vcmask 48160   ;;  %vm93_vm15 = vcmask 31760  }
   0xe   :  { %43 = vrot.lane.b32.xlu0 %v107_v7, %s137_s30  ;;  %49 = vrot.lane.b32.xlu1 %v108_v8, %s138_s2 }
  0x12   :  { %55 = vrot.lane.b32.xlu0 %v109_v9, %s139_s7  ;;  %61 = vrot.lane.b32.xlu1 %v110_v10, %s140_s8 }
  0x16   :  { %67 = vrot.lane.b32.xlu0 %v111_v11, %s141_s13  ;;  %73 = vrot.lane.b32.xlu1 %v112_v12, %s142_s14 }
  0x1a   :  { %79 = vrot.lane.b32.xlu0 %v113_v13, %s143_s19  ;;  %85 = vrot.lane.b32.xlu1 %v114_v14, %s144_s20 }
  0x1e   :  { %91 = vrot.lane.b32.xlu0 %v115_v15, %s145_s0 }
  0x74   :  { %v8_v16 = vpop.permute.xlu0 %7   ;;  %v20_v17 = vpop.permute.xlu1 %19  }
  0x75   :  { %10 = vst.msk [vmem:[#allocation0] sm:$0x1] %vm9_vm1, %v8_v16  }
  0x78   :  { %v14_v18 = vpop.permute.xlu0 %13   ;;  %v26_v19 = vpop.permute.xlu1 %25  }
  0x79   :  { %16 = vst.msk [vmem:[#allocation0] sm:$0x1] %vm15_vm2, %v14_v18  }
  0x7a   :  { %22 = vst.msk [vmem:[#allocation0] sm:$0x1] %vm21_vm3, %v20_v17  }
  0x7b   :  { %28 = vst.msk [vmem:[#allocation0] sm:$0x1] %vm27_vm4, %v26_v19  }
  0x7c   :  { %v32_v20 = vpop.permute.xlu0 %31   ;;  %v38_v21 = vpop.permute.xlu1 %37  }
  0x7d   :  { %34 = vst.msk [vmem:[#allocation0] sm:$0x1] %vm33_vm5, %v32_v20  }
  0x7e   :  { %40 = vst.msk [vmem:[#allocation0] sm:$0x1] %vm39_vm6, %v38_v21  }
  0x80   :  { %v44_v22 = vpop.permute.xlu0 %43   ;;  %v50_v23 = vpop.permute.xlu1 %49  }
  0x81   :  { %46 = vst.msk [vmem:[#allocation0] sm:$0x1] %vm45_vm7, %v44_v22  }
  0x82   :  { %52 = vst.msk [vmem:[#allocation0] sm:$0x1] %vm51_vm8, %v50_v23  }
  0x84   :  { %v56_v24 = vpop.permute.xlu0 %55   ;;  %v62_v25 = vpop.permute.xlu1 %61  }
  0x85   :  { %58 = vst.msk [vmem:[#allocation0] sm:$0x1] %vm57_vm9, %v56_v24  }
  0x86   :  { %64 = vst.msk [vmem:[#allocation0] sm:$0x1] %vm63_vm10, %v62_v25  }
  0x88   :  { %v68_v26 = vpop.permute.xlu0 %67   ;;  %v74_v27 = vpop.permute.xlu1 %73  }
  0x89   :  { %70 = vst.msk [vmem:[#allocation0] sm:$0x1] %vm69_vm11, %v68_v26  }
  0x8a   :  { %76 = vst.msk [vmem:[#allocation0] sm:$0x1] %vm75_vm12, %v74_v27  }
  0x8c   :  { %v80_v28 = vpop.permute.xlu0 %79   ;;  %v86_v29 = vpop.permute.xlu1 %85  }
  0x8d   :  { %82 = vst.msk [vmem:[#allocation0] sm:$0x1] %vm81_vm13, %v80_v28  }
  0x8e   :  { %88 = vst.msk [vmem:[#allocation0] sm:$0x1] %vm87_vm14, %v86_v29  }
  0x90   :  { %v92_v30 = vpop.permute.xlu0 %91  }
  0x91   :  { %94 = vst.msk [vmem:[#allocation0] sm:$0x1] %vm93_vm15, %v92_v30  }
  0x98   :  { %v98_v31 = vld [vmem:[#allocation0] sm:$0x1] }
  0x99   :  { %100 = vst [vmem:[%s208_s1] sm:$0x1] %v98_v31 }

// kernel: tile.18
= control target key start
LH: loop header
LB: loop body
LE: loop exit
PB: predicated region body
PF: predicated region fallthrough
CT: control target
= control target key end

     0   :  { %vm7_vm0 = vcmask 261120   ;;  %s37_s8 = smov 32   ;;  %s38_s9 = smov 64   ;;  %vm13_vm1 = vcmask 1048320   ;;  %vm19_vm2 = vcmask 785920   ;;  %vm25_vm3 = vcmask 523520   ;;  %s55_s0 = inlined_call_operand.vmem [shape: f32[4,32], index: 0, kind: input, shape index: {}]   ;;  %s56_s1 = inlined_call_operand.vmem [shape: f32[1,128], index: 1, kind: output, shape index: {}]  }
   0x1   :  { %v4_v0 = vld [vmem:[%s55_s0] sm:$0xf]  ;;  %s36_s0 = smov 96  }
   0x2   :  { %5 = vst [vmem:[#allocation1] sm:$0xf] %v4_v0 }
   0x9   :  { %v10_v1 = vld [vmem:[#allocation1 + $0x3] sm:$0x1]   ;;  %v22_v2 = vld [vmem:[#allocation1 + $0x1] sm:$0x1]   ;;  %v6_v3 = vld [vmem:[#allocation1] sm:$0x1]  }
   0xa   :  { %11 = vrot.lane.b32.xlu0 %v10_v1, %s36_s0  ;;  %23 = vrot.lane.b32.xlu1 %v22_v2, %s37_s8  ;;  %v16_v4 = vld [vmem:[#allocation1 + $0x2] sm:$0x1]   ;;  %8 = vst.msk [vmem:[#allocation0] sm:$0x1] %vm7_vm0, %v6_v3  }
   0xe   :  { %17 = vrot.lane.b32.xlu0 %v16_v4, %s38_s9 }
  0x7c   :  { %v12_v5 = vpop.permute.xlu0 %11   ;;  %v24_v6 = vpop.permute.xlu1 %23  }
  0x7d   :  { %14 = vst.msk [vmem:[#allocation0] sm:$0x1] %vm13_vm1, %v12_v5  }
  0x80   :  { %v18_v7 = vpop.permute.xlu0 %17  }
  0x81   :  { %20 = vst.msk [vmem:[#allocation0] sm:$0x1] %vm19_vm2, %v18_v7  }
  0x82   :  { %26 = vst.msk [vmem:[#allocation0] sm:$0x1] %vm25_vm3, %v24_v6  }
  0x89   :  { %v30_v8 = vld [vmem:[#allocation0] sm:$0x1] }
  0x8a   :  { %32 = vst [vmem:[%s56_s1] sm:$0x1] %v30_v8 }

// kernel: tile.14
= control target key start
LH: loop header
LB: loop body
LE: loop exit
PB: predicated region body
PF: predicated region fallthrough
CT: control target
= control target key end

     0   :  { %s28_s0 = inlined_call_operand.vmem [shape: f32[2], index: 0, kind: input, shape index: {}]   ;;  %s29_s1 = inlined_call_operand.vmem [shape: f32[16,2], index: 1, kind: output, shape index: {}]  }
   0x1   :  { %v4_v0 = vld [vmem:[%s28_s0] ss:$0 sm:$0xff] }
   0x2   :  { %5 = vst [vmem:[%s29_s1] sm:$0xff] %v4_v0  ;;  %8 = vst [vmem:[%s29_s1 + $0x8] sm:$0xff] %v4_v0 }

// kernel: sinusoidal_positional_embedding2.1
= control target key start
LH: loop header
LB: loop body
LE: loop exit
PB: predicated region body
PF: predicated region fallthrough
CT: control target
= control target key end

     0   :  { %v229_v0 = vmov 0.0   ;;  %vm230_vm0 = vmmov 0   ;;  %vm27_vm1 = vcmask 130048   ;;  %v231_v21 = vmov 683565275   ;;  %s298_s1 = inlined_call_operand.vmem [shape: bf16[16,128], index: 1, kind: input, shape index: {}]   ;;  %s299_s0 = inlined_call_operand.vmem [shape: bf16[8,16], index: 0, kind: input, shape index: {}]   ;;  %s300_s2 = inlined_call_operand.vmem [shape: f32[1,128], index: 2, kind: input, shape index: {}]   ;;  %s301_s3 = inlined_call_operand.vmem [shape: f32[1,128], index: 3, kind: input, shape index: {}]   ;;  %s302_s4 = inlined_call_operand.vmem [shape: f32[8,128], index: 4, kind: output, shape index: {}]  }
   0x1   :  { %206 = vmatprep.subr.bf16.mxu0 %v229_v0  ;;  %v224_v1 = vld [vmem:[%s298_s1] sm:$0xff]   ;;  %208 = vmatprep.mubr.msk.bf16.mxu0 %vm230_vm0, %v229_v0  ;;  %v232_v23 = vmov 2475754826   ;;  %v233_v26 = vmov 2131351028  }
   0x2   :  { %207 = vmatpush3.bf16.msra.mxu0 %v224_v1  ;;  %v18_v2 = vld [vmem:[%s299_s0] sm:$0xf]  ;;  %v234_v29 = vmov 2102212464   ;;  %v235_v32 = vmov 920167782  }
   0x3   :  { %v198_v3 = vld [vmem:[%s300_s2] ss:$0 sm:$0xff]  ;;  %v236_v35 = vmov 1326507024  }
   0x4   :  { %v199_v5 = vld [vmem:[%s301_s3] ss:$0 sm:$0xff] }
   0x5   :  { %209 = vmatmul.mubr.msk.bf16.vlgmr.msra.gmra.mrb[0].mxu0 %vm27_vm1, %v18_v2 }
  0xd8   :  { %v65_v4 = vpop.f32.mrb[0].mxu0 }
  0xd9   :  { %v78_v6 = vmul.f32 %v198_v3, %v65_v4  ;;  %v210_v7 = vpop.f32.mrb[1].mxu0 }
  0xda   :  { %v68_v8 = vpop.f32.mrb[2].mxu0 }
  0xdb   :  { %v274_v9 = vadd.f32 %v199_v5, %v78_v6  ;;  %v211_v10 = vpop.f32.mrb[3].mxu0 }
  0xdd   :  { %v90_v11 = vand.u32 2139095040, %v274_v9  ;;  %v87_v15 = vand.u32 2147483647, %v274_v9  ;;  %vm89_vm9 = vcmp.lt.s32.totalorder %v274_v9, 0  ;;  %vm179_vm14 = vweird.f32 %v274_v9 }
  0xdf   :  { %v91_v12 = vshrl.u32 %v90_v11, 23  ;;  %v94_v18 = vand.u32 8388607, %v87_v15  ;;  %vm88_vm10 = vcmp.le.f32.partialorder %v87_v15, 0.7853982 }
  0xe1   :  { %v200_v13 = vadd.s32 4294967169, %v91_v12  ;;  %v95_v37 = vor.u32 8388608, %v94_v18 }
  0xe3   :  { %v97_v14 = vadd.s32 1, %v200_v13  ;;  %v135_v51 = vshll.u32 %v95_v37, 8 }
  0xe5   :  { %vm98_vm2 = vcmp.gt.s32.totalorder %v97_v14, 0 }
  0xe6   :  { %v99_v16 = vsel %vm98_vm2, %v97_v14, 0 }
  0xe7   :  { %v101_v17 = vand.u32 31, %v99_v16  ;;  %v100_v20 = vshrl.u32 %v99_v16, 5 }
  0xe9   :  { %v102_v19 = vsub.s32 32, %v101_v17  ;;  %v104_v22 = vshll.u32 %v231_v21, %v101_v17  ;;  %v107_v24 = vshll.u32 %v232_v23, %v101_v17  ;;  %v110_v28 = vshll.u32 %v233_v26, %v101_v17 }
  0xea   :  { %v113_v31 = vshll.u32 %v234_v29, %v101_v17  ;;  %v116_v34 = vshll.u32 %v235_v32, %v101_v17  ;;  %vm119_vm3 = vcmp.lt.s32.totalorder %v100_v20, 1  ;;  %vm122_vm4 = vcmp.lt.s32.totalorder %v100_v20, 4 }
  0xeb   :  { %v105_v25 = vshrl.u32 %v232_v23, %v102_v19  ;;  %v108_v27 = vshrl.u32 %v233_v26, %v102_v19  ;;  %v111_v30 = vshrl.u32 %v234_v29, %v102_v19  ;;  %v114_v33 = vshrl.u32 %v235_v32, %v102_v19 }
  0xec   :  { %v117_v36 = vshrl.u32 %v236_v35, %v102_v19  ;;  %v103_v46 = vshrl.u32 %v231_v21, %v102_v19  ;;  %vm121_vm5 = vcmp.lt.s32.totalorder %v100_v20, 3  ;;  %vm120_vm6 = vcmp.lt.s32.totalorder %v100_v20, 2 }
  0xed   :  { %v106_v38 = vor.u32 %v105_v25, %v104_v22  ;;  %v109_v39 = vor.u32 %v108_v27, %v107_v24  ;;  %v112_v40 = vor.u32 %v111_v30, %v110_v28  ;;  %v115_v41 = vor.u32 %v114_v33, %v113_v31 }
  0xee   :  { %v118_v42 = vor.u32 %v117_v36, %v116_v34 }
  0xef   :  { %v124_v43 = vsel %vm122_vm4, %v112_v40, 2102212464  ;;  %v127_v44 = vsel %vm119_vm3, %v106_v38, %v109_v39  ;;  %v131_v45 = vsel %vm119_vm3, %v109_v39, %v112_v40  ;;  %v128_v47 = vsel %vm122_vm4, %v115_v41, 920167782 }
  0xf0   :  { %v132_v48 = vsel %vm122_vm4, %v118_v42, 1326507024  ;;  %v129_v49 = vsel %vm121_vm5, %v112_v40, %v128_v47  ;;  %v123_v52 = vsel %vm119_vm3, %v103_v46, %v106_v38  ;;  %v125_v53 = vsel %vm121_vm5, %v109_v39, %v124_v43 }
  0xf1   :  { %v133_v50 = vsel %vm121_vm5, %v115_v41, %v132_v48  ;;  %v130_v54 = vsel %vm120_vm6, %v127_v44, %v129_v49  ;;  %v126_v60 = vsel %vm120_vm6, %v123_v52, %v125_v53 }
  0xf2   :  { %v134_v55 = vsel %vm120_vm6, %v131_v45, %v133_v50  ;;  %v283_v58 = vmul.u32.u64.low %v135_v51, %v130_v54  ;;  %v284_v59 = vmul.u32.u64.high %v135_v51, %v130_v54, %v283_v58  ;;  %v142_v62 = vmul.u32 %v135_v51, %v126_v60 }
  0xf3   :  { %v280_v56 = vmul.u32.u64.low %v135_v51, %v134_v55  ;;  %v281_v57 = vmul.u32.u64.high %v135_v51, %v134_v55, %v280_v56 }
  0xf4   :  { %v145_v61 = vadd.s32 1, %v284_v59 }
  0xf5   :  { %vm144_vm7 = vc.u32 %v281_v57, %v283_v58  ;;  %v143_v11 = vadd.s32 %v283_v58, %v281_v57 }
  0xf6   :  { %v146_v63 = vsel %vm144_vm7, %v145_v61, %v284_v59 }
  0xf7   :  { %v147_v0 = vadd.s32 %v146_v63, %v142_v62 }
  0xf9   :  { %v148_v1 = vadd.s32 536870912, %v147_v0 }
  0xfb   :  { %v149_v2 = vshrl.u32 %v148_v1, 30 }
  0xfd   :  { %v150_v3 = vshll.u32 %v149_v2, 30  ;;  %v173_v24 = vsub.s32 4, %v149_v2 }
  0xff   :  { %v151_v4 = vsub.s32 %v147_v0, %v150_v3  ;;  %v174_v27 = vsel %vm89_vm9, %v173_v24, %v149_v2 }
 0x100   :  { %v176_v29 = vsel %vm88_vm10, 0, %v174_v27 }
 0x101   :  { %v153_v5 = vsub.s32 0, %v151_v4  ;;  %v180_v30 = vadd.s32 3, %v176_v29 }
 0x103   :  { %v201_v6 = vmin.u32 %v153_v5, %v151_v4  ;;  %v181_v31 = vand.u32 3, %v180_v30 }
 0x105   :  { %v155_v7 = vclz %v201_v6  ;;  %vm186_vm11 = vcmp.eq.s32.totalorder %v181_v31, 2  ;;  %vm183_vm12 = vcmp.eq.s32.totalorder %v181_v31, 0  ;;  %vm182_vm13 = vcmp.lt.s32.totalorder %v181_v31, 2 }
 0x107   :  { %v202_v8 = vadd.s32 4294967294, %v155_v7 }
 0x109   :  { %vm203_vm8 = vcmp.lt.s32.totalorder %v202_v8, 0 }
 0x10a   :  { %v158_v10 = vsel %vm203_vm8, 0, %v202_v8 }
 0x10b   :  { %v159_v12 = vsub.s32 32, %v158_v10  ;;  %v163_v13 = vsub.s32 4294967266, %v158_v10  ;;  %v160_v14 = vshll.u32 %v151_v4, %v158_v10 }
 0x10d   :  { %v161_v16 = vshrl.u32 %v143_v11, %v159_v12  ;;  %v164_v17 = vadd.s32 127, %v163_v13 }
 0x10f   :  { %v162_v18 = vor.u32 %v161_v16, %v160_v14  ;;  %v165_v19 = vshll.u32 %v164_v17, 23 }
 0x111   :  { %v166_v20 = vor.u32 4788187, %v165_v19  ;;  %v169_v22 = vcvt.s32.f32 %v162_v18 }
 0x113   :  { %v167_v21 = vand.u32 2147483647, %v166_v20 }
 0x115   :  { %v170_v23 = vmul.f32 %v169_v22, %v167_v21 }
 0x117   :  { %v171_v25 = vxor.u32 2147483648, %v170_v23 }
 0x119   :  { %v172_v26 = vsel %vm89_vm9, %v171_v25, %v170_v23 }
 0x11a   :  { %v175_v28 = vsel %vm88_vm10, %v274_v9, %v172_v26 }
 0x11b   :  { %225 = vcosq.f32 %v175_v28 }
 0x11c   :  { %227 = vsinq.f32 %v175_v28 }
 0x125   :  { %v226_v32 = vpop.eup %225 }
 0x126   :  { %v228_v33 = vpop.eup %227  ;;  %v187_v34 = vxor.u32 2147483648, %v226_v32 }
 0x127   :  { %v184_v35 = vxor.u32 2147483648, %v228_v33 }
 0x128   :  { %v188_v36 = vsel %vm186_vm11, %v187_v34, %v228_v33 }
 0x129   :  { %v185_v37 = vsel %vm183_vm12, %v226_v32, %v184_v35 }
 0x12a   :  { %v189_v15 = vsel %vm182_vm13, %v185_v37, %v188_v36 }
 0x12b   :  { %v190_v38 = vsel %vm179_vm14, nan, %v189_v15 }
 0x12c   :  { %191 = vst [vmem:[%s302_s4] sm:$0xff] %v190_v38 }

</bundles_post_ra>
